<compile_context>
chip_gen: v7x
topology: tpu7x:2x2x1
jax: 0.10.0
libtpu: 0.0.40
codegen_flags: <defaults>
</compile_context>

<pallas_src>
import math

import jax
import jax.numpy as jnp
from jax import lax
from jax.experimental import pallas as pl
from jax.experimental.pallas import tpu as pltpu

EPS = 1e-8
_LANE = 128
_NSTATS = 5  # sum_p, sum_t, sum_p^2, sum_t^2, sum_p*t


def _round_up(x, m):
    return ((x + m - 1) // m) * m


def _vmem_budget_bytes():
    """Per-generation VMEM budget for the double-buffered input tiles."""
    cap = 64 * 1024 * 1024  # conservative (v7x-sized) fallback
    try:
        info_cap = pltpu.get_tpu_info().vmem_capacity_bytes
        if isinstance(info_cap, int) and info_cap >= 32 * 1024 * 1024:
            cap = info_cap
    except Exception:
        pass
    limit = min(cap // 2, 96 * 1024 * 1024)            # scoped VMEM limit
    budget = max(16 * 1024 * 1024, limit - 12 * 1024 * 1024)  # headroom
    return budget, limit


def _make_stats_kernel(BS, TF, KT, FR, ragged, unroll):
    nchunks = TF // _LANE

    def kernel(pred_ref, true_ref, acc_ref):
        s = pl.program_id(0)
        k = pl.program_id(1)

        @pl.when(k == 0)
        def _init():
            acc_ref[...] = jnp.zeros_like(acc_ref)

        tile_base = (s * KT + k) * TF  # absolute lane offset of this tile

        def chunk(c, carry):
            sp, st, spp, stt, spt = carry
            off = pl.multiple_of(c * _LANE, _LANE)
            p = pred_ref[:, pl.ds(off, _LANE)].astype(jnp.float32)
            t = true_ref[:, pl.ds(off, _LANE)].astype(jnp.float32)
            if ragged:
                # Mask the (stale / undefined) lanes past the valid extent of
                # the partial boundary tile.  Included only when FR % TF != 0.
                lane = lax.broadcasted_iota(jnp.int32, (BS, _LANE), 1)
                valid = (tile_base + off + lane) < FR
                p = jnp.where(valid, p, 0.0)
                t = jnp.where(valid, t, 0.0)
            return (sp + p, st + t, spp + p * p, stt + t * t, spt + p * t)

        zero = jnp.zeros((BS, _LANE), jnp.float32)
        sp, st, spp, stt, spt = lax.fori_loop(
            0, nchunks, chunk, (zero, zero, zero, zero, zero), unroll=unroll)

        # One RMW per grid step into the VMEM-resident output block.
        acc_ref[0] += sp
        acc_ref[1] += st
        acc_ref[2] += spp
        acc_ref[3] += stt
        acc_ref[4] += spt

    return kernel


def mse_correlation_loss(y_pred, y_true, alpha=0.5, *, max_lanes_per_tile=None):
    assert y_pred.shape == y_true.shape
    B = int(y_pred.shape[0])
    F = int(math.prod(y_pred.shape[1:]))
    itemsize = max(jnp.dtype(y_pred.dtype).itemsize, jnp.dtype(y_true.dtype).itemsize)
    pack = max(8, 32 // itemsize)  # sublanes per vreg at this element width

    # ---- sublane packing: zero-copy row-major reshape (B, F) -> (BS, FR) ----
    SUB = pack // math.gcd(B, pack)
    if F % SUB != 0:
        # Zero-copy fallback (no jnp.pad, no extra HBM pass): pick the divisor
        # of F with the best sublane occupancy.
        best_d, best_score = 1, -1.0
        for d in range(1, min(F, 8 * pack) + 1):
            if F % d != 0 or B * d > 8 * pack:
                continue
            bs = B * d
            score = bs / _round_up(bs, pack) - 1e-6 * d  # prefer smaller SUB on ties
            if score > best_score:
                best_d, best_score = d, score
        SUB = best_d
    BS = B * SUB
    FR = F // SUB

    pred = y_pred.reshape(BS, FR)  # native dtype, contiguous reshape: no copy
    true = y_true.reshape(BS, FR)

    # ---- tile size from the per-generation VMEM budget ----
    budget, vmem_limit = _vmem_budget_bytes()
    # 2 inputs x 2 pipeline buffers at native dtype.
    tf_budget = max(_LANE, (budget // (4 * BS * itemsize)) // _LANE * _LANE)
    TF = min(tf_budget, _round_up(FR, _LANE))
    if max_lanes_per_tile is not None:
        TF = max(_LANE, min(TF, _round_up(max_lanes_per_tile, _LANE)))
    if TF >= 8 * _LANE:
        TF = (TF // (8 * _LANE)) * (8 * _LANE)  # chunk count stays a multiple of 8
    nchunks = TF // _LANE
    unroll = True if nchunks <= 8 else 8

    num_tiles = -(-FR // TF)
    # 2-way 'parallel' split (engages the 2nd TensorCore on v7x) only when the
    # tiles divide evenly: balanced cores, no fully out-of-bounds blocks.
    NSPLIT = 2 if (num_tiles >= 2 and num_tiles % 2 == 0) else 1
    KT = num_tiles // NSPLIT
    ragged = (FR % TF) != 0

    kernel = _make_stats_kernel(BS, TF, KT, FR, ragged, unroll)

    in_spec = pl.BlockSpec((BS, TF), lambda s, k: (0, s * KT + k))
    out_spec = pl.BlockSpec((None, _NSTATS, BS, _LANE), lambda s, k: (s, 0, 0, 0))
    out_shape = jax.ShapeDtypeStruct((NSPLIT, _NSTATS, BS, _LANE), jnp.float32)

    grid_spec = pltpu.PrefetchScalarGridSpec(
        num_scalar_prefetch=0,
        grid=(NSPLIT, KT),
        in_specs=[in_spec, in_spec],
        out_specs=out_spec,
    )

    cost = pl.CostEstimate(
        flops=8 * B * F,
        transcendentals=0,
        bytes_accessed=2 * B * F * itemsize + NSPLIT * _NSTATS * BS * _LANE * 4,
    )

    stats = pl.pallas_call(
        kernel,
        out_shape=out_shape,
        grid_spec=grid_spec,
        compiler_params=pltpu.CompilerParams(
            dimension_semantics=("parallel", "arbitrary"),
            vmem_limit_bytes=vmem_limit,
        ),
        cost_estimate=cost,
    )(pred, true)

    # ---- tiny O(B) epilogue in plain JAX: fold splits / sub-rows / lanes ----
    folded = stats.reshape(NSPLIT, _NSTATS, B, SUB, _LANE).sum(axis=(0, 3, 4))
    s_p, s_t, s_pp, s_tt, s_pt = (folded[i] for i in range(_NSTATS))
    n = jnp.float32(F)
    # MSE from raw moments (d^2 accumulator dropped in the hot loop); note the
    # cancellation risk if y_pred ~= y_true with huge magnitudes.
    sum_d2 = s_pp - 2.0 * s_pt + s_tt
    mse = jnp.sum(sum_d2) / jnp.float32(B * F)
    cov = s_pt - s_p * s_t / n
    var_p = s_pp - s_p * s_p / n
    var_t = s_tt - s_t * s_t / n
    corr = cov / jnp.sqrt(var_p * var_t + jnp.float32(EPS))
    corr_loss = jnp.float32(1.0) - jnp.mean(corr)
    return mse + jnp.float32(alpha) * corr_loss


def _reference_loss(y_pred, y_true, alpha=0.5):
    # Pure-JAX mirror of the PyTorch module, for sanity checking.
    y_pred = y_pred.astype(jnp.float32)
    y_true = y_true.astype(jnp.float32)
    mse = jnp.mean((y_pred - y_true) ** 2)
    B = y_pred.shape[0]
    p = y_pred.reshape(B, -1)
    t = y_true.reshape(B, -1)
    pc = p - jnp.mean(p, axis=1, keepdims=True)
    tc = t - jnp.mean(t, axis=1, keepdims=True)
    num = jnp.sum(pc * tc, axis=1)
    den = jnp.sqrt(jnp.sum(pc ** 2, axis=1) * jnp.sum(tc ** 2, axis=1) + EPS)
    corr = num / den
    return mse + alpha * (1.0 - jnp.mean(corr))


if __name__ == "__main__":
    key = jax.random.PRNGKey(0)
    k1, k2, k3, k4, k5, k6 = jax.random.split(key, 6)

    # 1) Primary small NCHW example matching the PyTorch module (single tile,
    #    packed sub-rows, non-ragged).
    y_pred = jax.random.normal(k1, (2, 4, 16, 16), dtype=jnp.float32)
    y_true = jax.random.normal(k2, (2, 4, 16, 16), dtype=jnp.float32)
    loss = jax.block_until_ready(mse_correlation_loss(y_pred, y_true))
    ref = _reference_loss(y_pred, y_true)
    assert jnp.allclose(loss, ref, rtol=1e-4, atol=1e-4), (loss, ref)

    # 2) Multi-tile reduction + 2-way 'parallel' split + ragged last tile
    #    (forced small tiles, batch that does not divide 8).
    yp2 = jax.random.normal(k3, (3, 4, 16, 60), dtype=jnp.float32)
    yt2 = jax.random.normal(k4, (3, 4, 16, 60), dtype=jnp.float32)
    loss2 = jax.block_until_ready(
        mse_correlation_loss(yp2, yt2, max_lanes_per_tile=128))
    ref2 = _reference_loss(yp2, yt2)
    assert jnp.allclose(loss2, ref2, rtol=1e-4, atol=1e-4), (loss2, ref2)

    # 3) Ragged F with native bf16 inputs: divisor-based packing fallback
    #    (no jnp.pad, no wrapper up-cast), in-kernel tail masking.
    yp3 = jax.random.normal(k1, (2, 3, 5, 7), dtype=jnp.float32).astype(jnp.bfloat16)
    yt3 = jax.random.normal(k2, (2, 3, 5, 7), dtype=jnp.float32).astype(jnp.bfloat16)
    loss3 = jax.block_until_ready(mse_correlation_loss(yp3, yt3))
    ref3 = _reference_loss(yp3, yt3)
    assert jnp.allclose(loss3, ref3, rtol=1e-4, atol=1e-4), (loss3, ref3)

    # 4) Larger feature map exercising the rolled (unroll=8) chunk loop.
    yp4 = jax.random.normal(k5, (2, 8, 64, 64), dtype=jnp.float32)
    yt4 = jax.random.normal(k6, (2, 8, 64, 64), dtype=jnp.float32)
    loss4 = jax.block_until_ready(mse_correlation_loss(yp4, yt4))
    ref4 = _reference_loss(yp4, yt4)
    assert jnp.allclose(loss4, ref4, rtol=1e-4, atol=1e-4), (loss4, ref4)

    print("KERNEL_OK")
</pallas_src>

<mosaic_0001>
module attributes {stable_mosaic.version = 11 : i64} {
  func.func @kernel(%arg0: i32, %arg1: i32, %arg2: memref<8x256xf32, #tpu.memory_space<vmem>>, %arg3: memref<8x256xf32, #tpu.memory_space<vmem>>, %arg4: memref<1x5x8x128xf32, #tpu.memory_space<vmem>>) attributes {dimension_semantics = [#tpu.dimension_semantics<parallel>, #tpu.dimension_semantics<arbitrary>], iteration_bounds = array<i64: 1, 1>, scalar_prefetch = 0 : i64, scratch_operands = 0 : i64, tpu.core_type = #tpu.core_type<tc>, window_params = [{transform_indices = @transform_0, window_bounds = array<i64: 8, 256>}, {transform_indices = @transform_1, window_bounds = array<i64: 8, 256>}, {transform_indices = @transform_2, window_bounds = array<i64: 1, 5, 8, 128>}]} {
    %c0_i32 = arith.constant 0 : i32
    %0 = arith.cmpi eq, %arg1, %c0_i32 : i32
    %1 = arith.extui %0 : i1 to i32
    %c0_i32_0 = arith.constant 0 : i32
    %2 = arith.cmpi ne, %1, %c0_i32_0 : i32
    scf.if %2 {
      %cst_42 = arith.constant 0.000000e+00 : f32
      %62 = vector.broadcast %cst_42 : f32 to vector<5x8x128xf32>
      %c0_43 = arith.constant 0 : index
      %c0_44 = arith.constant 0 : index
      %c0_45 = arith.constant 0 : index
      %c0_46 = arith.constant 0 : index
      %63 = vector.load %arg4[%c0_43, %c0_44, %c0_45, %c0_46] : memref<1x5x8x128xf32, #tpu.memory_space<vmem>>, vector<1x5x8x128xf32>
      %64 = vector.shape_cast %63 : vector<1x5x8x128xf32> to vector<5x8x128xf32>
      %65 = vector.shape_cast %62 : vector<5x8x128xf32> to vector<1x5x8x128xf32>
      tpu.vector_store %arg4[%c0_43, %c0_44, %c0_45, %c0_46], %65 {strides = array<i32>} : memref<1x5x8x128xf32, #tpu.memory_space<vmem>>, vector<1x5x8x128xf32>,
    } else {
    }
    %cst = arith.constant 0.000000e+00 : f32
    %3 = vector.broadcast %cst : f32 to vector<8x128xf32>
    %c0_i32_1 = arith.constant 0 : i32
    %c128_i32 = arith.constant 128 : i32
    %4 = arith.muli %c0_i32_1, %c128_i32 : i32
    %5 = tpu.assume_multiple %4, 128 : i32
    %c0 = arith.constant 0 : index
    %6 = arith.index_cast %5 : i32 to index
    %7 = vector.load %arg2[%c0, %6] : memref<8x256xf32, #tpu.memory_space<vmem>>, vector<8x128xf32>
    %c0_2 = arith.constant 0 : index
    %8 = arith.index_cast %5 : i32 to index
    %9 = vector.load %arg3[%c0_2, %8] : memref<8x256xf32, #tpu.memory_space<vmem>>, vector<8x128xf32>
    %10 = arith.addf %3, %7 : vector<8x128xf32>
    %11 = arith.addf %3, %9 : vector<8x128xf32>
    %12 = arith.mulf %7, %7 : vector<8x128xf32>
    %13 = arith.addf %3, %12 : vector<8x128xf32>
    %14 = arith.mulf %9, %9 : vector<8x128xf32>
    %15 = arith.addf %3, %14 : vector<8x128xf32>
    %16 = arith.mulf %7, %9 : vector<8x128xf32>
    %17 = arith.addf %3, %16 : vector<8x128xf32>
    %c1_i32 = arith.constant 1 : i32
    %c128_i32_3 = arith.constant 128 : i32
    %18 = arith.muli %c1_i32, %c128_i32_3 : i32
    %19 = tpu.assume_multiple %18, 128 : i32
    %c0_4 = arith.constant 0 : index
    %20 = arith.index_cast %19 : i32 to index
    %21 = vector.load %arg2[%c0_4, %20] : memref<8x256xf32, #tpu.memory_space<vmem>>, vector<8x128xf32>
    %c0_5 = arith.constant 0 : index
    %22 = arith.index_cast %19 : i32 to index
    %23 = vector.load %arg3[%c0_5, %22] : memref<8x256xf32, #tpu.memory_space<vmem>>, vector<8x128xf32>
    %24 = arith.addf %10, %21 : vector<8x128xf32>
    %25 = arith.addf %11, %23 : vector<8x128xf32>
    %26 = arith.mulf %21, %21 : vector<8x128xf32>
    %27 = arith.addf %13, %26 : vector<8x128xf32>
    %28 = arith.mulf %23, %23 : vector<8x128xf32>
    %29 = arith.addf %15, %28 : vector<8x128xf32>
    %30 = arith.mulf %21, %23 : vector<8x128xf32>
    %31 = arith.addf %17, %30 : vector<8x128xf32>
    %c2_i32 = arith.constant 2 : i32
    %c0_6 = arith.constant 0 : index
    %c0_7 = arith.constant 0 : index
    %c0_8 = arith.constant 0 : index
    %c0_9 = arith.constant 0 : index
    %32 = vector.load %arg4[%c0_6, %c0_7, %c0_8, %c0_9] : memref<1x5x8x128xf32, #tpu.memory_space<vmem>>, vector<1x1x8x128xf32>
    %33 = vector.shape_cast %32 : vector<1x1x8x128xf32> to vector<8x128xf32>
    %34 = arith.addf %33, %24 : vector<8x128xf32>
    %c0_10 = arith.constant 0 : index
    %c0_11 = arith.constant 0 : index
    %c0_12 = arith.constant 0 : index
    %c0_13 = arith.constant 0 : index
    %35 = vector.load %arg4[%c0_10, %c0_11, %c0_12, %c0_13] : memref<1x5x8x128xf32, #tpu.memory_space<vmem>>, vector<1x1x8x128xf32>
    %36 = vector.shape_cast %35 : vector<1x1x8x128xf32> to vector<8x128xf32>
    %37 = vector.shape_cast %34 : vector<8x128xf32> to vector<1x1x8x128xf32>
    tpu.vector_store %arg4[%c0_10, %c0_11, %c0_12, %c0_13], %37 {strides = array<i32>} : memref<1x5x8x128xf32, #tpu.memory_space<vmem>>, vector<1x1x8x128xf32>,
    %c0_14 = arith.constant 0 : index
    %c1 = arith.constant 1 : index
    %c0_15 = arith.constant 0 : index
    %c0_16 = arith.constant 0 : index
    %38 = vector.load %arg4[%c0_14, %c1, %c0_15, %c0_16] : memref<1x5x8x128xf32, #tpu.memory_space<vmem>>, vector<1x1x8x128xf32>
    %39 = vector.shape_cast %38 : vector<1x1x8x128xf32> to vector<8x128xf32>
    %40 = arith.addf %39, %25 : vector<8x128xf32>
    %c0_17 = arith.constant 0 : index
    %c1_18 = arith.constant 1 : index
    %c0_19 = arith.constant 0 : index
    %c0_20 = arith.constant 0 : index
    %41 = vector.load %arg4[%c0_17, %c1_18, %c0_19, %c0_20] : memref<1x5x8x128xf32, #tpu.memory_space<vmem>>, vector<1x1x8x128xf32>
    %42 = vector.shape_cast %41 : vector<1x1x8x128xf32> to vector<8x128xf32>
    %43 = vector.shape_cast %40 : vector<8x128xf32> to vector<1x1x8x128xf32>
    tpu.vector_store %arg4[%c0_17, %c1_18, %c0_19, %c0_20], %43 {strides = array<i32>} : memref<1x5x8x128xf32, #tpu.memory_space<vmem>>, vector<1x1x8x128xf32>,
    %c0_21 = arith.constant 0 : index
    %c2 = arith.constant 2 : index
    %c0_22 = arith.constant 0 : index
    %c0_23 = arith.constant 0 : index
    %44 = vector.load %arg4[%c0_21, %c2, %c0_22, %c0_23] : memref<1x5x8x128xf32, #tpu.memory_space<vmem>>, vector<1x1x8x128xf32>
    %45 = vector.shape_cast %44 : vector<1x1x8x128xf32> to vector<8x128xf32>
    %46 = arith.addf %45, %27 : vector<8x128xf32>
    %c0_24 = arith.constant 0 : index
    %c2_25 = arith.constant 2 : index
    %c0_26 = arith.constant 0 : index
    %c0_27 = arith.constant 0 : index
    %47 = vector.load %arg4[%c0_24, %c2_25, %c0_26, %c0_27] : memref<1x5x8x128xf32, #tpu.memory_space<vmem>>, vector<1x1x8x128xf32>
    %48 = vector.shape_cast %47 : vector<1x1x8x128xf32> to vector<8x128xf32>
    %49 = vector.shape_cast %46 : vector<8x128xf32> to vector<1x1x8x128xf32>
    tpu.vector_store %arg4[%c0_24, %c2_25, %c0_26, %c0_27], %49 {strides = array<i32>} : memref<1x5x8x128xf32, #tpu.memory_space<vmem>>, vector<1x1x8x128xf32>,
    %c0_28 = arith.constant 0 : index
    %c3 = arith.constant 3 : index
    %c0_29 = arith.constant 0 : index
    %c0_30 = arith.constant 0 : index
    %50 = vector.load %arg4[%c0_28, %c3, %c0_29, %c0_30] : memref<1x5x8x128xf32, #tpu.memory_space<vmem>>, vector<1x1x8x128xf32>
    %51 = vector.shape_cast %50 : vector<1x1x8x128xf32> to vector<8x128xf32>
    %52 = arith.addf %51, %29 : vector<8x128xf32>
    %c0_31 = arith.constant 0 : index
    %c3_32 = arith.constant 3 : index
    %c0_33 = arith.constant 0 : index
    %c0_34 = arith.constant 0 : index
    %53 = vector.load %arg4[%c0_31, %c3_32, %c0_33, %c0_34] : memref<1x5x8x128xf32, #tpu.memory_space<vmem>>, vector<1x1x8x128xf32>
    %54 = vector.shape_cast %53 : vector<1x1x8x128xf32> to vector<8x128xf32>
    %55 = vector.shape_cast %52 : vector<8x128xf32> to vector<1x1x8x128xf32>
    tpu.vector_store %arg4[%c0_31, %c3_32, %c0_33, %c0_34], %55 {strides = array<i32>} : memref<1x5x8x128xf32, #tpu.memory_space<vmem>>, vector<1x1x8x128xf32>,
    %c0_35 = arith.constant 0 : index
    %c4 = arith.constant 4 : index
    %c0_36 = arith.constant 0 : index
    %c0_37 = arith.constant 0 : index
    %56 = vector.load %arg4[%c0_35, %c4, %c0_36, %c0_37] : memref<1x5x8x128xf32, #tpu.memory_space<vmem>>, vector<1x1x8x128xf32>
    %57 = vector.shape_cast %56 : vector<1x1x8x128xf32> to vector<8x128xf32>
    %58 = arith.addf %57, %31 : vector<8x128xf32>
    %c0_38 = arith.constant 0 : index
    %c4_39 = arith.constant 4 : index
    %c0_40 = arith.constant 0 : index
    %c0_41 = arith.constant 0 : index
    %59 = vector.load %arg4[%c0_38, %c4_39, %c0_40, %c0_41] : memref<1x5x8x128xf32, #tpu.memory_space<vmem>>, vector<1x1x8x128xf32>
    %60 = vector.shape_cast %59 : vector<1x1x8x128xf32> to vector<8x128xf32>
    %61 = vector.shape_cast %58 : vector<8x128xf32> to vector<1x1x8x128xf32>
    tpu.vector_store %arg4[%c0_38, %c4_39, %c0_40, %c0_41], %61 {strides = array<i32>} : memref<1x5x8x128xf32, #tpu.memory_space<vmem>>, vector<1x1x8x128xf32>,
    return
  }
  func.func @transform_0(%arg0: i32, %arg1: i32) -> (i32, i32) {
    %c1_i32 = arith.constant 1 : i32
    %0 = arith.muli %arg0, %c1_i32 : i32
    %1 = arith.addi %0, %arg1 : i32
    %c0_i32 = arith.constant 0 : i32
    %c0_i32_0 = arith.constant 0 : i32
    return %c0_i32, %1 : i32, i32
  }
  func.func @transform_1(%arg0: i32, %arg1: i32) -> (i32, i32) {
    %c1_i32 = arith.constant 1 : i32
    %0 = arith.muli %arg0, %c1_i32 : i32
    %1 = arith.addi %0, %arg1 : i32
    %c0_i32 = arith.constant 0 : i32
    %c0_i32_0 = arith.constant 0 : i32
    return %c0_i32, %1 : i32, i32
  }
  func.func @transform_2(%arg0: i32, %arg1: i32) -> (i32, i32, i32, i32) {
    %c0_i32 = arith.constant 0 : i32
    %c0_i32_0 = arith.constant 0 : i32
    %c0_i32_1 = arith.constant 0 : i32
    %c0_i32_2 = arith.constant 0 : i32
    return %arg0, %c0_i32, %c0_i32_0, %c0_i32_1 : i32, i32, i32, i32
  }
}

</mosaic_0001>

<bundles_post_ra>
// kernel: tpu_custom_call.1
= control target key start
LH: loop header
LB: loop body
LE: loop exit
PB: predicated region body
PF: predicated region fallthrough
CT: control target
= control target key end

     0   :  { %7 = vsyncpa [#allocation3], 0  ;;  %s250_s0 = inlined_call_operand.hbm [shape: f32[8,256], index: 0, kind: input, shape index: {}]   ;;  %s251_s1 = inlined_call_operand.hbm [shape: f32[8,256], index: 1, kind: input, shape index: {}]   ;;  %s252_s2 = inlined_call_operand.hbm [shape: f32[1,5,8,128], index: 2, kind: output, shape index: {}]  }
   0x1   :  { %8 = vsyncpa [#allocation6], 0 }
   0x2   :  { %9 = vsyncpa [#allocation4], 0  ;;  %s194_s9 = smov [#allocation2]   ;;  %s195_s11 = smov [#allocation5]  }
   0x3   :  { %s20_s10 = sshll.u32 %s194_s9, 4  ;;  %s34_s12 = sshll.u32 %s195_s11, 4  ;;  %s21_s10 = int_to_ptr.vmem [resolvable:$true] %s20_s10  ;;  %s35_s12 = int_to_ptr.vmem [resolvable:$true] %s34_s12 }
   0x4   :  { %s122_s15 = scalar_lea.hbm %s250_s0, 256 }
   0x5   :  { %p123_p0 = scmp.ne.s32.totalorder %s250_s0, %s122_s15  ;;  %p126_p1 = scmp.lt.u32.totalorder %s122_s15, %s250_s0 }
   0x7   :  { %p128_p2 = pnand %p126_p1, %p123_p0 }
   0x9   :  { %131 = shalt.err (!%p128_p2)
}
   0xa   :  { %s132_s20 = scalar_lea.vmem %s21_s10, 256  ;;  %p137_p4 = scmp.lt.s32.totalorder %s21_s10, %s21_s10 }
   0xb   :  { %p133_p3 = scmp.ne.s32.totalorder %s21_s10, %s132_s20  ;;  %p138_p5 = scmp.lt.s32.totalorder %s132_s20, %s132_s20 }
   0xd   :  { %p139_p6 = por %p138_p5, %p137_p4 }
   0xf   :  { %p140_p7 = pnand %p139_p6, %p133_p3 }
  0x11   :  { %143 = shalt.err (!%p140_p7)
}
  0x12   :  { %23 = dma.hbm_to_vmem [thread:$0]  %s250_s0, 256, %s21_s10, [#allocation3]  }
  0x13   :  { %s144_s25 = scalar_lea.hbm %s251_s1, 256 }
  0x14   :  { %p145_p8 = scmp.ne.s32.totalorder %s251_s1, %s144_s25  ;;  %p148_p9 = scmp.lt.u32.totalorder %s144_s25, %s251_s1 }
  0x16   :  { %p150_p10 = pnand %p148_p9, %p145_p8 }
  0x18   :  { %153 = shalt.err (!%p150_p10)
}
  0x19   :  { %s154_s30 = scalar_lea.vmem %s35_s12, 256  ;;  %p159_p12 = scmp.lt.s32.totalorder %s35_s12, %s35_s12 }
  0x1a   :  { %p155_p11 = scmp.ne.s32.totalorder %s35_s12, %s154_s30  ;;  %p160_p13 = scmp.lt.s32.totalorder %s154_s30, %s154_s30 }
  0x1c   :  { %p161_p0 = por %p160_p13, %p159_p12 }
  0x1e   :  { %p162_p1 = pnand %p161_p0, %p155_p11 }
  0x20   :  { %165 = shalt.err (!%p162_p1)
}
  0x21   :  { %37 = dma.hbm_to_vmem [thread:$0]  %s251_s1, 256, %s35_s12, [#allocation6]  }
  0x22   :  { %188 = dma.done.wait [#allocation3], 256  }
  0x23   :  { %189 = vsyncadd [#allocation3], 4294967040 }
  0x24   :  { %190 = dma.done.wait [#allocation6], 256  }
  0x25   :  { %191 = vsyncadd [#allocation6], 4294967040  ;;  %v57_v0 = vld [vmem:[#allocation2] sm:$0xff]  ;;  %v68_v1 = vld [vmem:[#allocation2 + $0x8] sm:$0xff]  ;;  %s196_s4 = smov [#allocation7]  }
  0x26   :  { %v58_v2 = vld [vmem:[#allocation5] sm:$0xff]  ;;  %v71_v3 = vadd.f32 %v68_v1, %v57_v0  ;;  %v70_v4 = vld [vmem:[#allocation5 + $0x8] sm:$0xff]  ;;  %v61_v5 = vmul.f32 %v57_v0, %v57_v0  ;;  %v73_v6 = vmul.f32 %v68_v1, %v68_v1  ;;  %s103_s5 = sshll.u32 %s196_s4, 4  ;;  %s104_s5 = int_to_ptr.vmem [resolvable:$true] %s103_s5 }
  0x27   :  { %v63_v7 = vmul.f32 %v58_v2, %v58_v2  ;;  %v72_v8 = vadd.f32 %v70_v4, %v58_v2  ;;  %v75_v9 = vmul.f32 %v70_v4, %v70_v4  ;;  %v65_v10 = vmul.f32 %v58_v2, %v57_v0  ;;  %s166_s1 = scalar_lea.vmem %s104_s5, 640  ;;  %p171_p3 = scmp.lt.s32.totalorder %s104_s5, %s104_s5 }
  0x28   :  { %v77_v11 = vmul.f32 %v70_v4, %v68_v1  ;;  %v74_v12 = vadd.f32 %v73_v6, %v61_v5  ;;  %81 = vst [vmem:[#allocation7] sm:$0xff] %v71_v3  ;;  %p167_p2 = scmp.ne.s32.totalorder %s104_s5, %s166_s1  ;;  %p172_p4 = scmp.lt.s32.totalorder %s166_s1, %s166_s1 }
  0x29   :  { %v76_v13 = vadd.f32 %v75_v9, %v63_v7  ;;  %85 = vst [vmem:[#allocation7 + $0x8] sm:$0xff] %v72_v8 }
  0x2a   :  { %v78_v14 = vadd.f32 %v77_v11, %v65_v10  ;;  %89 = vst [vmem:[#allocation7 + $0x10] sm:$0xff] %v74_v12  ;;  %p173_p5 = por %p172_p4, %p171_p3 }
  0x2b   :  { %93 = vst [vmem:[#allocation7 + $0x18] sm:$0xff] %v76_v13 }
  0x2c   :  { %97 = vst [vmem:[#allocation7 + $0x20] sm:$0xff] %v78_v14  ;;  %p174_p6 = pnand %p173_p5, %p167_p2 }
  0x2e   :  { %177 = shalt.err (!%p174_p6)
}
  0x2f   :  { %s178_s8 = scalar_lea.hbm %s252_s2, 640 }
  0x30   :  { %p179_p7 = scmp.ne.s32.totalorder %s252_s2, %s178_s8  ;;  %p182_p8 = scmp.lt.u32.totalorder %s178_s8, %s252_s2 }
  0x32   :  { %p184_p9 = pnand %p182_p8, %p179_p7 }
  0x34   :  { %187 = shalt.err (!%p184_p9)
}
  0x35   :  { %s197_s13 = smov 128   ;;  %s198_s14 = smov 8  }
  0x36   :  { %109 = dma.vmem_to_hbm [thread:$0]  %s104_s5, 640, %s252_s2, [#allocation4], %s197_s13, %s197_s13, %s198_s14  }
  0x37   :  { %192 = dma.done.wait [#allocation4], 640  }
  0x38   :  { %193 = vsyncadd [#allocation4], 4294966656 }
  0x39   :  { %113 = vsyncpa [#allocation3], 1 }
  0x3a   :  { %114 = vsyncpa [#allocation6], 1 }
  0x3b   :  { %115 = vsyncpa [#allocation4], 1 }

</bundles_post_ra>
